<compile_context>
chip_gen: v7x
topology: tpu7x:2x2x1
jax: 0.10.0
libtpu: 0.0.40
codegen_flags: <defaults>
</compile_context>

<pallas_src>
import functools
import math

import jax
import jax.numpy as jnp
from jax.experimental import pallas as pl
from jax.experimental.pallas import tpu as pltpu

_VMEM_LIMIT = 32 * 1024 * 1024   # fits v7x's 64 MiB physical VMEM with headroom
_BN_EPS = 1e-3                   # torchvision BasicConv2d: BatchNorm2d(eps=0.001)
_BN_SCALE = 1.0 / math.sqrt(1.0 + _BN_EPS)


def _round_up(x, m):
    return ((x + m - 1) // m) * m


# ----------------------------------------------------------------------------
# Pallas kernels
# ----------------------------------------------------------------------------

def _gemm_bias_kernel(x_ref, w_ref, b_ref, o_ref, *, relu):
    acc = jnp.dot(x_ref[...], w_ref[...], preferred_element_type=jnp.float32)
    acc = acc + b_ref[...]
    if relu:
        acc = jnp.maximum(acc, 0.0)
    o_ref[...] = acc.astype(o_ref.dtype)


@functools.lru_cache(maxsize=None)
def _gemm_call(M, K, Np, tm, tn, relu, out_dtype):
    kernel = functools.partial(_gemm_bias_kernel, relu=relu)
    f = pl.pallas_call(
        kernel,
        out_shape=jax.ShapeDtypeStruct((M, Np), out_dtype),
        grid_spec=pltpu.PrefetchScalarGridSpec(
            num_scalar_prefetch=0,
            grid=(pl.cdiv(M, tm), Np // tn),
            in_specs=[
                pl.BlockSpec((tm, K), lambda i, j: (i, 0)),
                pl.BlockSpec((K, tn), lambda i, j: (0, j)),
                pl.BlockSpec((1, tn), lambda i, j: (0, j)),
            ],
            out_specs=pl.BlockSpec((tm, tn), lambda i, j: (i, j)),
        ),
        compiler_params=pltpu.CompilerParams(
            dimension_semantics=("parallel", "parallel"),
            vmem_limit_bytes=_VMEM_LIMIT,
        ),
    )
    return jax.jit(f)


def _pick_tm(M, row_bytes):
    """Large M tile (fewer grid steps, weight fetched once), VMEM-safe, and
    keeping >= 2 M tiles so both v7x TensorCores get work."""
    tm = min(512, _round_up(M, 8))
    while tm > 8 and tm * row_bytes > 4 * 1024 * 1024:
        tm = max(8, (tm // 2) // 8 * 8)
    if M > 8 and pl.cdiv(M, tm) < 2:
        tm = max(8, _round_up((M + 1) // 2, 8))
    return tm


def gemm_bias(x, w, b, relu=False, out_dtype=jnp.float32,
              compute_dtype=jnp.bfloat16):
    """(M,K) @ (K,N) + b[N], optional ReLU, on the MXU (f32 accumulation).

    M is NOT padded on the host: the grid uses pl.cdiv and Pallas masks the
    final partial M tile, so no extra HBM copy of the large im2col matrices.
    With a single N tile the weight block index never changes, so the weight
    is DMA'd into VMEM exactly once per layer.
    """
    M, K = x.shape
    K2, N = w.shape
    assert K == K2
    Np = _round_up(N, 128)
    if Np <= 1536:
        tn = Np                      # single N tile -> weight stays VMEM-resident
    else:
        Np = _round_up(N, 256)
        tn = 256
    itemsize = jnp.dtype(compute_dtype).itemsize
    tm = _pick_tm(M, K * itemsize)
    xp = x.astype(compute_dtype)
    wp = jnp.pad(w.astype(compute_dtype), ((0, 0), (0, Np - N)))
    bp = jnp.pad(b.astype(jnp.float32).reshape(1, N), ((0, 0), (0, Np - N)))
    out = _gemm_call(M, K, Np, tm, tn, bool(relu), jnp.dtype(out_dtype))(xp, wp, bp)
    return out[:, :N] if Np != N else out


def _pool_kernel(x_ref, o_ref, *, op, taps):
    acc = x_ref[0].astype(jnp.float32)
    for t in range(1, taps):
        v = x_ref[t].astype(jnp.float32)
        acc = jnp.maximum(acc, v) if op == "max" else acc + v
    if op == "mean":
        acc = acc * (1.0 / taps)
    o_ref[...] = acc.astype(o_ref.dtype)


@functools.lru_cache(maxsize=None)
def _pool_call(M, KK, C, tm, op, out_dtype):
    kernel = functools.partial(_pool_kernel, op=op, taps=KK)
    f = pl.pallas_call(
        kernel,
        out_shape=jax.ShapeDtypeStruct((M, C), out_dtype),
        grid_spec=pltpu.PrefetchScalarGridSpec(
            num_scalar_prefetch=0,
            grid=(pl.cdiv(M, tm),),
            in_specs=[pl.BlockSpec((KK, tm, C), lambda i: (0, i, 0))],
            out_specs=pl.BlockSpec((tm, C), lambda i: (i, 0)),
        ),
        compiler_params=pltpu.CompilerParams(
            dimension_semantics=("parallel",),
            vmem_limit_bytes=_VMEM_LIMIT,
        ),
    )
    return jax.jit(f)


def pool_reduce(patches, op, out_dtype=None):
    """Tap-major (taps, M, C) -> (M, C) max/mean over taps (reduction in Pallas).

    Tap-major blocks give contiguous (8,128)-aligned (tm, C) loads per tap
    instead of strided sublane reads.
    """
    KK, M, C = patches.shape
    if out_dtype is None:
        out_dtype = patches.dtype
    itemsize = jnp.dtype(patches.dtype).itemsize
    tm = min(512, _round_up(M, 8))
    while tm > 8 and KK * tm * C * itemsize > 8 * 1024 * 1024:
        tm = max(8, (tm // 2) // 8 * 8)
    if M > 8 and pl.cdiv(M, tm) < 2:
        tm = max(8, _round_up((M + 1) // 2, 8))
    return _pool_call(M, KK, C, tm, op, jnp.dtype(out_dtype))(patches)


# ----------------------------------------------------------------------------
# Glue: patch extraction (pure indexing), deterministic parameter generation
# ----------------------------------------------------------------------------

def _extract_taps(x, kh, kw, sh, sw, ph, pw):
    """NHWC -> list of kh*kw shifted views (N, Ho, Wo, C). Pure indexing glue."""
    # TODO(synk): longer term, fold the tap expansion into the GEMM/pool kernels
    # via a kh*kw "arbitrary" grid axis + shifted index_map to avoid the HBM blowup.
    if ph or pw:
        x = jnp.pad(x, ((0, 0), (ph, ph), (pw, pw), (0, 0)))
    N, H, W, C = x.shape
    Ho = (H - kh) // sh + 1
    Wo = (W - kw) // sw + 1
    taps = []
    for i in range(kh):
        for j in range(kw):
            taps.append(x[:, i:i + (Ho - 1) * sh + 1:sh,
                          j:j + (Wo - 1) * sw + 1:sw, :])
    return taps, Ho, Wo


class ParamGen:
    """Deterministic parameter factory (synthetic weights, no checkpoint load)."""

    def __init__(self, seed):
        self._key = jax.random.PRNGKey(seed)

    def key(self):
        self._key, sub = jax.random.split(self._key)
        return sub

    def conv_weight(self, kh, kw, cin, cout):
        fan_in = kh * kw * cin
        w = jax.random.normal(self.key(), (kh, kw, cin, cout), jnp.float32)
        return w * jnp.sqrt(2.0 / fan_in)

    def uniform(self, shape, lo, hi):
        return jax.random.uniform(self.key(), shape, jnp.float32, lo, hi)


def basic_conv(pg, x, cout, kh, kw, stride=(1, 1), pad=(0, 0)):
    """Inception BasicConv2d: conv(no bias) + BatchNorm(eval) + ReLU via Pallas GEMM."""
    N, H, W, C = x.shape
    # BatchNorm (eval) folded into the GEMM; identity running stats (see TODO below).
    w = pg.conv_weight(kh, kw, C, cout).reshape(kh * kw * C, cout) * _BN_SCALE
    bias = jnp.zeros((cout,), jnp.float32)
    if kh == 1 and kw == 1 and stride == (1, 1) and pad == (0, 0):
        cols, Ho, Wo = x.reshape(N * H * W, C), H, W      # 1x1: no im2col copy
    else:
        taps, Ho, Wo = _extract_taps(x, kh, kw, stride[0], stride[1], pad[0], pad[1])
        cols = jnp.stack(taps, axis=3).reshape(N * Ho * Wo, kh * kw * C)
    out = gemm_bias(cols, w, bias, relu=True, out_dtype=jnp.bfloat16)
    return out.reshape(N, Ho, Wo, cout)


def fused_conv1x1(pg, x, couts):
    """Parallel BasicConv2d 1x1 branch heads on the same input, fused in one GEMM."""
    N, H, W, C = x.shape
    w = jnp.concatenate(
        [pg.conv_weight(1, 1, C, co).reshape(C, co) for co in couts], axis=1) * _BN_SCALE
    total = sum(couts)
    bias = jnp.zeros((total,), jnp.float32)
    out = gemm_bias(x.reshape(N * H * W, C), w, bias, relu=True,
                    out_dtype=jnp.bfloat16).reshape(N, H, W, total)
    res, off = [], 0
    for co in couts:
        res.append(out[..., off:off + co])
        off += co
    return res


def max_pool2d(x, k=3, s=2, p=0):
    N, _, _, C = x.shape
    taps, Ho, Wo = _extract_taps(x, k, k, s, s, p, p)
    pt = jnp.stack(taps, axis=0).reshape(k * k, N * Ho * Wo, C)
    return pool_reduce(pt, "max").reshape(N, Ho, Wo, C)


def avg_pool2d(x, k, s, p=0):
    # count_include_pad=True semantics (PyTorch F.avg_pool2d default), matching
    # torchvision Inception's in-block average pooling.
    N, _, _, C = x.shape
    taps, Ho, Wo = _extract_taps(x, k, k, s, s, p, p)
    pt = jnp.stack(taps, axis=0).reshape(k * k, N * Ho * Wo, C)
    return pool_reduce(pt, "mean").reshape(N, Ho, Wo, C)


# ----------------------------------------------------------------------------
# Inception-v3 blocks (torchvision architecture, channel-last)
# ----------------------------------------------------------------------------

def inception_a(pg, x, pool_features):
    b1, b5, b3 = fused_conv1x1(pg, x, (64, 48, 64))
    b5 = basic_conv(pg, b5, 64, 5, 5, pad=(2, 2))
    b3 = basic_conv(pg, b3, 96, 3, 3, pad=(1, 1))
    b3 = basic_conv(pg, b3, 96, 3, 3, pad=(1, 1))
    bp = avg_pool2d(x, 3, 1, 1)
    bp = basic_conv(pg, bp, pool_features, 1, 1)
    return jnp.concatenate([b1, b5, b3, bp], axis=-1)


def inception_b(pg, x):
    b3 = basic_conv(pg, x, 384, 3, 3, stride=(2, 2))
    bd = basic_conv(pg, x, 64, 1, 1)
    bd = basic_conv(pg, bd, 96, 3, 3, pad=(1, 1))
    bd = basic_conv(pg, bd, 96, 3, 3, stride=(2, 2))
    bp = max_pool2d(x, 3, 2)
    return jnp.concatenate([b3, bd, bp], axis=-1)


def inception_c(pg, x, c7):
    b1, b7, bd = fused_conv1x1(pg, x, (192, c7, c7))
    b7 = basic_conv(pg, b7, c7, 1, 7, pad=(0, 3))
    b7 = basic_conv(pg, b7, 192, 7, 1, pad=(3, 0))
    bd = basic_conv(pg, bd, c7, 7, 1, pad=(3, 0))
    bd = basic_conv(pg, bd, c7, 1, 7, pad=(0, 3))
    bd = basic_conv(pg, bd, c7, 7, 1, pad=(3, 0))
    bd = basic_conv(pg, bd, 192, 1, 7, pad=(0, 3))
    bp = avg_pool2d(x, 3, 1, 1)
    bp = basic_conv(pg, bp, 192, 1, 1)
    return jnp.concatenate([b1, b7, bd, bp], axis=-1)


def inception_d(pg, x):
    b3, b7 = fused_conv1x1(pg, x, (192, 192))
    b3 = basic_conv(pg, b3, 320, 3, 3, stride=(2, 2))
    b7 = basic_conv(pg, b7, 192, 1, 7, pad=(0, 3))
    b7 = basic_conv(pg, b7, 192, 7, 1, pad=(3, 0))
    b7 = basic_conv(pg, b7, 192, 3, 3, stride=(2, 2))
    bp = max_pool2d(x, 3, 2)
    return jnp.concatenate([b3, b7, bp], axis=-1)


def inception_e(pg, x):
    b1, b3, bd = fused_conv1x1(pg, x, (320, 384, 448))
    b3a = basic_conv(pg, b3, 384, 1, 3, pad=(0, 1))
    b3b = basic_conv(pg, b3, 384, 3, 1, pad=(1, 0))
    b3 = jnp.concatenate([b3a, b3b], axis=-1)
    bd = basic_conv(pg, bd, 384, 3, 3, pad=(1, 1))
    bda = basic_conv(pg, bd, 384, 1, 3, pad=(0, 1))
    bdb = basic_conv(pg, bd, 384, 3, 1, pad=(1, 0))
    bd = jnp.concatenate([bda, bdb], axis=-1)
    bp = avg_pool2d(x, 3, 1, 1)
    bp = basic_conv(pg, bp, 192, 1, 1)
    return jnp.concatenate([b1, b3, bd, bp], axis=-1)


# ----------------------------------------------------------------------------
# CNN_ENCODER.forward
# ----------------------------------------------------------------------------

def cnn_encoder_forward(x, nef=32, seed=0):
    """x: (batch, video_len, 3, 299, 299) float32 NCHW frames.

    Returns (features, cnn_code, story_features) matching CNN_ENCODER.forward.
    """
    pg = ParamGen(seed)
    video_len = x.shape[1]
    x = x.reshape(-1, x.shape[-3], x.shape[-2], x.shape[-1])   # (N, 3, H, W)
    n = x.shape[0]
    x = jnp.transpose(x, (0, 2, 3, 1)).astype(jnp.bfloat16)    # NCHW -> NHWC, bf16

    # ---- frozen Inception-v3 backbone (architecture reproduced) ----
    # TODO(synk): torchvision pretrained Inception-v3 weights / BN running stats
    # cannot be loaded here; weights are deterministic He-init, BN stats identity.
    x = basic_conv(pg, x, 32, 3, 3, stride=(2, 2))   # Conv2d_1a_3x3 -> 149x149x32
    x = basic_conv(pg, x, 32, 3, 3)                  # Conv2d_2a_3x3 -> 147x147x32
    x = basic_conv(pg, x, 64, 3, 3, pad=(1, 1))      # Conv2d_2b_3x3 -> 147x147x64
    x = max_pool2d(x, 3, 2)                          #               -> 73x73x64
    x = basic_conv(pg, x, 80, 1, 1)                  # Conv2d_3b_1x1 -> 73x73x80
    x = basic_conv(pg, x, 192, 3, 3)                 # Conv2d_4a_3x3 -> 71x71x192
    x = max_pool2d(x, 3, 2)                          #               -> 35x35x192
    x = inception_a(pg, x, 32)                       # Mixed_5b -> 35x35x256
    x = inception_a(pg, x, 64)                       # Mixed_5c -> 35x35x288
    x = inception_a(pg, x, 64)                       # Mixed_5d -> 35x35x288
    x = inception_b(pg, x)                           # Mixed_6a -> 17x17x768
    x = inception_c(pg, x, 128)                      # Mixed_6b
    x = inception_c(pg, x, 160)                      # Mixed_6c
    x = inception_c(pg, x, 160)                      # Mixed_6d
    x = inception_c(pg, x, 192)                      # Mixed_6e -> 17x17x768
    features_map = x                                 # (N, 17, 17, 768)
    assert features_map.shape[1:] == (17, 17, 768)
    x = inception_d(pg, x)                           # Mixed_7a -> 8x8x1280
    x = inception_e(pg, x)                           # Mixed_7b -> 8x8x2048
    x = inception_e(pg, x)                           # Mixed_7c -> 8x8x2048
    assert x.shape[1:] == (8, 8, 2048)

    # ---- the module's own trainable heads (f32) ----
    initrange = 0.1
    # F.avg_pool2d(x, kernel_size=8) + view -> (N, 2048)   (reduction in Pallas)
    pooled = pool_reduce(jnp.transpose(x.reshape(n, 64, 2048), (1, 0, 2)),
                         "mean", out_dtype=jnp.float32)
    # emb_cnn_code: nn.Linear(2048, nef), weight ~ U(-0.1, 0.1), default bias init
    w_code = pg.uniform((nef, 2048), -initrange, initrange)
    b_code = pg.uniform((nef,), -1.0 / math.sqrt(2048.0), 1.0 / math.sqrt(2048.0))
    cnn_code = gemm_bias(pooled, w_code.T, b_code, relu=False,
                         out_dtype=jnp.float32, compute_dtype=jnp.float32)
    # emb_features: conv1x1(768, nef), bias=False, weight ~ U(-0.1, 0.1)
    w_feat = pg.uniform((nef, 768), -initrange, initrange)
    feats = gemm_bias(features_map.reshape(n * 17 * 17, 768), w_feat.T,
                      jnp.zeros((nef,), jnp.float32), relu=False,
                      out_dtype=jnp.float32, compute_dtype=jnp.float32)
    features = jnp.transpose(feats.reshape(n, 17, 17, nef), (0, 3, 1, 2))  # NCHW out
    # story_transform(mean over video_len of cnn_code)   (mean + Linear in Pallas)
    w_story = pg.uniform((nef, nef), -initrange, initrange)
    b_story = pg.uniform((nef,), -1.0 / math.sqrt(float(nef)), 1.0 / math.sqrt(float(nef)))
    story_in = pool_reduce(jnp.transpose(cnn_code.reshape(-1, video_len, nef), (1, 0, 2)),
                           "mean", out_dtype=jnp.float32)
    story_features = gemm_bias(story_in, w_story.T, b_story, relu=False,
                               out_dtype=jnp.float32, compute_dtype=jnp.float32)
    return features, cnn_code, story_features


if __name__ == "__main__":
    key = jax.random.PRNGKey(0)
    batch, video_len, nef = 1, 2, 32
    # The Inception-v3 spatial pipeline (conv stem, Mixed blocks, avg_pool2d(8)
    # into Linear(2048, nef)) forces 299x299 inputs; batch/video_len kept small.
    x = jax.random.uniform(key, (batch, video_len, 3, 299, 299), jnp.float32)
    features, cnn_code, story = cnn_encoder_forward(x, nef=nef, seed=0)
    jax.block_until_ready((features, cnn_code, story))
    assert features.shape == (batch * video_len, nef, 17, 17)
    assert cnn_code.shape == (batch * video_len, nef)
    assert story.shape == (batch, nef)
    assert bool(jnp.all(jnp.isfinite(features)))
    assert bool(jnp.all(jnp.isfinite(cnn_code)))
    assert bool(jnp.all(jnp.isfinite(story)))
    print("KERNEL_OK")
</pallas_src>

<mosaic_0001>
module attributes {stable_mosaic.version = 11 : i64} {
  func.func @_gemm_bias_kernel(%arg0: i32, %arg1: i32, %arg2: memref<512x27xbf16, #tpu.memory_space<vmem>>, %arg3: memref<27x128xbf16, #tpu.memory_space<vmem>>, %arg4: memref<1x128xf32, #tpu.memory_space<vmem>>, %arg5: memref<512x128xbf16, #tpu.memory_space<vmem>>) attributes {dimension_semantics = [#tpu.dimension_semantics<parallel>, #tpu.dimension_semantics<parallel>], iteration_bounds = array<i64: 87, 1>, scalar_prefetch = 0 : i64, scratch_operands = 0 : i64, tpu.core_type = #tpu.core_type<tc>, window_params = [{transform_indices = @transform_0, window_bounds = array<i64: 512, 27>}, {transform_indices = @transform_1, window_bounds = array<i64: 27, 128>}, {transform_indices = @transform_2, window_bounds = array<i64: 1, 128>}, {transform_indices = @transform_3, window_bounds = array<i64: 512, 128>}]} {
    %c0 = arith.constant 0 : index
    %c0_0 = arith.constant 0 : index
    %0 = vector.load %arg2[%c0, %c0_0] : memref<512x27xbf16, #tpu.memory_space<vmem>>, vector<512x27xbf16>
    %c0_1 = arith.constant 0 : index
    %c0_2 = arith.constant 0 : index
    %1 = vector.load %arg3[%c0_1, %c0_2] : memref<27x128xbf16, #tpu.memory_space<vmem>>, vector<27x128xbf16>
    %cst = arith.constant dense<0.000000e+00> : vector<512x128xf32>
    %2 = tpu.matmul %0, %1, %cst {dimension_numbers = #tpu.dot_dimension_numbers<[1], [0], [0], [1], [0, 0, 1, 1], [], []>} : vector<512x27xbf16>, vector<27x128xbf16>, vector<512x128xf32> -> vector<512x128xf32>
    %c0_3 = arith.constant 0 : index
    %c0_4 = arith.constant 0 : index
    %3 = vector.load %arg4[%c0_3, %c0_4] : memref<1x128xf32, #tpu.memory_space<vmem>>, vector<1x128xf32>
    %4 = vector.broadcast %3 : vector<1x128xf32> to vector<512x128xf32>
    %5 = arith.addf %2, %4 : vector<512x128xf32>
    %cst_5 = arith.constant 0.000000e+00 : f32
    %6 = vector.broadcast %cst_5 : f32 to vector<512x128xf32>
    %7 = arith.maximumf %5, %6 : vector<512x128xf32>
    %8 = arith.truncf %7 : vector<512x128xf32> to vector<512x128xbf16>
    %c0_6 = arith.constant 0 : index
    %c0_7 = arith.constant 0 : index
    %9 = vector.load %arg5[%c0_6, %c0_7] : memref<512x128xbf16, #tpu.memory_space<vmem>>, vector<512x128xbf16>
    tpu.vector_store %arg5[%c0_6, %c0_7], %8 {strides = array<i32>} : memref<512x128xbf16, #tpu.memory_space<vmem>>, vector<512x128xbf16>,
    return
  }
  func.func @transform_0(%arg0: i32, %arg1: i32) -> (i32, i32) {
    %c0_i32 = arith.constant 0 : i32
    %c0_i32_0 = arith.constant 0 : i32
    return %arg0, %c0_i32 : i32, i32
  }
  func.func @transform_1(%arg0: i32, %arg1: i32) -> (i32, i32) {
    %c0_i32 = arith.constant 0 : i32
    %c0_i32_0 = arith.constant 0 : i32
    return %c0_i32, %arg1 : i32, i32
  }
  func.func @transform_2(%arg0: i32, %arg1: i32) -> (i32, i32) {
    %c0_i32 = arith.constant 0 : i32
    %c0_i32_0 = arith.constant 0 : i32
    return %c0_i32, %arg1 : i32, i32
  }
  func.func @transform_3(%arg0: i32, %arg1: i32) -> (i32, i32) {
    %c0_i32 = arith.constant 0 : i32
    return %arg0, %arg1 : i32, i32
  }
}

</mosaic_0001>

<bundles_post_ra>
// kernel: tpu_custom_call.1
= control target key start
LH: loop header
LB: loop body
LE: loop exit
PB: predicated region body
PF: predicated region fallthrough
CT: control target
= control target key end

     0   :  { %8 = vsyncpa [#allocation3], 0  ;;  %s2401_s0 = inlined_call_operand.vmem [shape: bf16[44402,27], index: 0, kind: input, shape index: {}]   ;;  %s2402_s1 = inlined_call_operand.vmem [shape: bf16[27,128], index: 1, kind: input, shape index: {}]   ;;  %s2403_s2 = inlined_call_operand.vmem [shape: f32[1,128], index: 2, kind: input, shape index: {}]   ;;  %s2404_s3 = inlined_call_operand.hbm [shape: bf16[44402,128], index: 3, kind: output, shape index: {}]  }
   0x1   :  { %10 = vsyncpa [#allocation3 + $0x1], 0  ;;  %s2092_s12 = smov 0   ;;  %s2094_s13 = smov 0  }
   0x2   :  { %s2096_s14 = smov 0   ;;  %s2098_s15 = smov 0  }
   0x3   :  { %s2100_s16 = smov 0   ;;  %s2102_s17 = smov 0  }
   0x4 LB: > { %s1385_s18 = sadd.s32 4294967295, %s2066_s17   ;;  %s1386_s19 = sadd.s32 4294967294, %s2066_s17   ;;  %s2066_s17 = sphi %s2102_s17, %s16_s17   ;;  %s2062_s16 = sphi %s2100_s16, %s2411_s16   ;;  %s2058_s15 = sphi %s2098_s15, %s2410_s15   ;;  %s2054_s14 = sphi %s2096_s14, %s2409_s14   ;;  %s2050_s13 = sphi %s2094_s13, %s2408_s13   ;;  %s2046_s12 = sphi %s2092_s12, %s2407_s12  }
   0x5   : > { %s28_s20 = sadd.s32 1, %s2062_s16  ;;  %s115_s21 = sadd.s32 1, %s2054_s14 }
   0x6   : > { %p30_p0 = scmp.ge.s32.totalorder %s28_s20, 87  ;;  %p125_p1 = scmp.ne.s32.totalorder %s2054_s14, %s2050_s13 }
   0x7   : > { %p126_p2 = scmp.eq.s32.totalorder %s1385_s18, 86  ;;  %p131_p3 = scmp.ne.s32.totalorder %s2050_s13, %s2046_s12 }
   0x8   : > { %s2413_s20 = smov (%p30_p0, %s28_s20), 0  ;;  %p132_p5 = scmp.eq.s32.totalorder %s1386_s19, 86 }
   0x9   : > { %p2132_p4 = por %p126_p2, %p125_p1  ;;  %s110_s23 = ssub.s32 %s2062_s16, %s2413_s20 }
   0xa   : > { %p1391_p6 = scmp.ge.s32.totalorder %s2066_s17, 1  ;;  %p113_p7 = scmp.eq.s32.totalorder %s110_s23, 0 }
   0xb   : > { %p2139_p8 = por %p132_p5, %p131_p3  ;;  %p180_p9 = scmp.lt.s32.totalorder %s2066_s17, 88 }
   0xc   : > { %s2145_s25 = scalar_select %p113_p7, %s2054_s14, %s115_s21  }
   0xd   : > { %p181_p10 = pnand %p1391_p6, %p180_p9 }
   0xe   : > { %v1954_v0 = vld [vmem:[%s2402_s1] sm:$0xff] (!%p181_p10)   ;;  %vm585_vm0 = vcmask (!%p181_p10), 1044480   ;;  %v1955_v1 = vld [vmem:[%s2402_s1 + $0x8] sm:$0x3f] (!%p181_p10)   ;;  %vm586_vm1 = vcmask (!%p181_p10), 1045504   ;;  %s2154_s30 = sshll.u32 (!%p181_p10), %s2058_s15, 6 }
   0xf   : > { %184 = sbr.rel (%p181_p10) target bundleno = 335 (0x14f), region = 32  ;;  %1825 = vmatprep.subr.bf16.mxu0 (!%p181_p10), %v1954_v0  ;;  %1893 = vmatprep.subr.bf16.mxu1 (!%p181_p10), %v1954_v0  ;;  %v2068_v2 = vmov (!%p181_p10), 65535   ;;  %p220_p11 = scmp.lt.s32.totalorder (!%p181_p10), %s2154_s30, 5550  ;;  %vm488_vm2 = vcmask (!%p181_p10), 220160   ;;  %v2231_v38 = vld [vmem:[%s2403_s2] ss:$0 sm:$0xff] (!%p181_p10) }
  0x10   : > { %1826 = vmatpush3.bf16.msra.mxu0 (!%p181_p10), %v1954_v0  ;;  %1895 = vmatpush3.bf16.msra.mxu1 (!%p181_p10), %v1954_v0  ;;  %v587_v3 = vsel (!%p181_p10), %vm585_vm0, 4294967295, %v2068_v2  ;;  %s212_s9 = sand.u32 (!%p181_p10), 1, %s2050_s13  }
  0x11   : > { %v588_v4 = vsel (!%p181_p10), %vm586_vm1, %v587_v3, 0  ;;  %s1392_s18 = sshll.u32 (!%p181_p10), %s212_s9, 8  ;;  %s2335_s21 = scalar_lea.sflag (!%p181_p10), [#allocation3], %s212_s9 }
  0x12   : > { %v590_v5 = vand.u32 (!%p181_p10), %v1955_v1, %v588_v4  ;;  %s2243_s19 = scalar_lea.vmem (!%p181_p10), [#allocation2], %s1392_s18 }
  0x14   : > { %1827 = vmatprep.subr.bf16.mxu0 (!%p181_p10), %v590_v5  ;;  %1894 = vmatprep.subr.bf16.mxu1 (!%p181_p10), %v590_v5 }
  0x15   : > { %1828 = vmatpush3.bf16.msra.mxu0 (!%p181_p10), %v590_v5  ;;  %1896 = vmatpush3.bf16.msra.mxu1 (!%p181_p10), %v590_v5 }
  0x16   : > { %s221_s4 = scalar_select %p220_p11, %s2154_s30, 5550 }
  0x17   : > { %s1274_s23 = ssub.s32 (%p2132_p4), 5551, %s2154_s30 }
  0x18   : > { %s1394_s5 = sshll.u32 %s221_s4, 2  ;;  %p1275_p12 = scmp.lt.s32.totalorder (%p2132_p4), %s1274_s23, 64 }
  0x19   : > { %s2161_s8 = scalar_lea.vmem %s2401_s0, %s1394_s5 }
  0x1a   : > { %v1956_v6 = vld [vmem:[%s2161_s8] sm:$0xff]   ;;  %v1958_v8 = vld [vmem:[%s2161_s8 + $0x8] sm:$0xff]   ;;  %v1960_v10 = vld [vmem:[%s2161_s8 + $0x10] sm:$0xff]  }
  0x1b   : > { %v1957_v7 = vld [vmem:[%s2161_s8 + $0x80] sm:$0xff]   ;;  %1829 = vmatprep.mubr.msk.bf16.mxu0 %vm488_vm2, %v1956_v6  ;;  %v1959_v9 = vld [vmem:[%s2161_s8 + $0x88] sm:$0xff]   ;;  %v1961_v11 = vld [vmem:[%s2161_s8 + $0x90] sm:$0xff]  }
  0x1c   : > { %1861 = vmatprep.mubr.msk.bf16.mxu1 %vm488_vm2, %v1957_v7  ;;  %1830 = vmatmul.mubr.msk.bf16.vlgmr.msra.gmra.mrb[0].mxu0 %vm488_vm2, %v1958_v8  ;;  %v1962_v12 = vld [vmem:[%s2161_s8 + $0x18] sm:$0xff]   ;;  %v1964_v14 = vld [vmem:[%s2161_s8 + $0x20] sm:$0xff]   ;;  %v1966_v16 = vld [vmem:[%s2161_s8 + $0x28] sm:$0xff]  }
  0x1d   : > { %1862 = vmatmul.mubr.msk.bf16.vlgmr.msra.gmra.mrb[0].mxu1 %vm488_vm2, %v1959_v9  ;;  %1833 = vmatprep.mubr.msk.bf16.mxu0 %vm488_vm2, %v1960_v10  ;;  %v1963_v13 = vld [vmem:[%s2161_s8 + $0x98] sm:$0xff]   ;;  %v1965_v15 = vld [vmem:[%s2161_s8 + $0xa0] sm:$0xff]   ;;  %v1967_v17 = vld [vmem:[%s2161_s8 + $0xa8] sm:$0xff]  }
  0x1e   : > { %1865 = vmatprep.mubr.msk.bf16.mxu1 %vm488_vm2, %v1961_v11  ;;  %v1968_v18 = vld [vmem:[%s2161_s8 + $0x30] sm:$0xff]   ;;  %v1970_v20 = vld [vmem:[%s2161_s8 + $0x38] sm:$0xff]   ;;  %v1972_v22 = vld [vmem:[%s2161_s8 + $0x40] sm:$0xff]  }
  0x1f   : > { %v1969_v19 = vld [vmem:[%s2161_s8 + $0xb0] sm:$0xff]   ;;  %v1971_v21 = vld [vmem:[%s2161_s8 + $0xb8] sm:$0xff]   ;;  %v1973_v23 = vld [vmem:[%s2161_s8 + $0xc0] sm:$0xff]  }
  0x20   : > { %v1974_v24 = vld [vmem:[%s2161_s8 + $0x48] sm:$0xff]   ;;  %v1976_v26 = vld [vmem:[%s2161_s8 + $0x50] sm:$0xff]   ;;  %v1978_v28 = vld [vmem:[%s2161_s8 + $0x58] sm:$0xff]  }
  0x21   : > { %v1975_v25 = vld [vmem:[%s2161_s8 + $0xc8] sm:$0xff]   ;;  %v1977_v27 = vld [vmem:[%s2161_s8 + $0xd0] sm:$0xff]   ;;  %v1979_v29 = vld [vmem:[%s2161_s8 + $0xd8] sm:$0xff]  }
  0x22   : > { %v1980_v30 = vld [vmem:[%s2161_s8 + $0x60] sm:$0xff]   ;;  %v1982_v32 = vld [vmem:[%s2161_s8 + $0x68] sm:$0xff]   ;;  %v1984_v34 = vld [vmem:[%s2161_s8 + $0x70] sm:$0xff]  }
  0x23   : > { %v1981_v31 = vld [vmem:[%s2161_s8 + $0xe0] sm:$0xff]   ;;  %v1983_v33 = vld [vmem:[%s2161_s8 + $0xe8] sm:$0xff]   ;;  %v1985_v35 = vld [vmem:[%s2161_s8 + $0xf0] sm:$0xff]  }
  0x24   : > { %1834 = vmatmul.mubr.msk.bf16.gmra.mrb[4].mxu0 %vm488_vm2, %v1962_v12  ;;  %v1986_v36 = vld [vmem:[%s2161_s8 + $0x78] sm:$0xff]  }
  0x25   : > { %1866 = vmatmul.mubr.msk.bf16.gmra.mrb[4].mxu1 %vm488_vm2, %v1963_v13  ;;  %1837 = vmatprep.mubr.msk.bf16.mxu0 %vm488_vm2, %v1964_v14  ;;  %v1987_v37 = vld [vmem:[%s2161_s8 + $0xf8] sm:$0xff]  }
  0x26   : > { %1869 = vmatprep.mubr.msk.bf16.mxu1 %vm488_vm2, %v1965_v15 }
  0x2c   : > { %1838 = vmatmul.mubr.msk.bf16.gmra.mrb[8].mxu0 %vm488_vm2, %v1966_v16 }
  0x2d   : > { %1870 = vmatmul.mubr.msk.bf16.gmra.mrb[8].mxu1 %vm488_vm2, %v1967_v17  ;;  %1841 = vmatprep.mubr.msk.bf16.mxu0 %vm488_vm2, %v1968_v18 }
  0x2e   : > { %1873 = vmatprep.mubr.msk.bf16.mxu1 %vm488_vm2, %v1969_v19 }
  0x34   : > { %1842 = vmatmul.mubr.msk.bf16.gmra.mrb[12].mxu0 %vm488_vm2, %v1970_v20 }
  0x35   : > { %1874 = vmatmul.mubr.msk.bf16.gmra.mrb[12].mxu1 %vm488_vm2, %v1971_v21  ;;  %1845 = vmatprep.mubr.msk.bf16.mxu0 %vm488_vm2, %v1972_v22 }
  0x36   : > { %1877 = vmatprep.mubr.msk.bf16.mxu1 %vm488_vm2, %v1973_v23 }
  0x3c   : > { %1846 = vmatmul.mubr.msk.bf16.gmra.mrb[16].mxu0 %vm488_vm2, %v1974_v24 }
  0x3d   : > { %1878 = vmatmul.mubr.msk.bf16.gmra.mrb[16].mxu1 %vm488_vm2, %v1975_v25  ;;  %1849 = vmatprep.mubr.msk.bf16.mxu0 %vm488_vm2, %v1976_v26 }
  0x3e   : > { %1881 = vmatprep.mubr.msk.bf16.mxu1 %vm488_vm2, %v1977_v27 }
  0x44   : > { %1850 = vmatmul.mubr.msk.bf16.gmra.mrb[20].mxu0 %vm488_vm2, %v1978_v28 }
  0x45   : > { %1882 = vmatmul.mubr.msk.bf16.gmra.mrb[20].mxu1 %vm488_vm2, %v1979_v29  ;;  %1853 = vmatprep.mubr.msk.bf16.mxu0 %vm488_vm2, %v1980_v30 }
  0x46   : > { %1885 = vmatprep.mubr.msk.bf16.mxu1 %vm488_vm2, %v1981_v31 }
  0x4c   : > { %1854 = vmatmul.mubr.msk.bf16.gmra.mrb[24].mxu0 %vm488_vm2, %v1982_v32 }
  0x4d   : > { %1886 = vmatmul.mubr.msk.bf16.gmra.mrb[24].mxu1 %vm488_vm2, %v1983_v33  ;;  %1857 = vmatprep.mubr.msk.bf16.mxu0 %vm488_vm2, %v1984_v34 }
  0x4e   : > { %1889 = vmatprep.mubr.msk.bf16.mxu1 %vm488_vm2, %v1985_v35 }
  0x54   : > { %1858 = vmatmul.mubr.msk.bf16.gmra.mrb[28].mxu0 %vm488_vm2, %v1986_v36 }
  0x55   : > { %1890 = vmatmul.mubr.msk.bf16.gmra.mrb[28].mxu1 %vm488_vm2, %v1987_v37 }
  0xef   : > { %v1831_v39 = vpop.f32.mrb[0].mxu0 }
  0xf0   : > { %v635_v40 = vadd.f32 %v1831_v39, %v2231_v38  ;;  %v1863_v41 = vpop.f32.mrb[0].mxu1  ;;  %v626_v42 = vpop.f32.mrb[1].mxu0 }
  0xf1   : > { %v763_v43 = vadd.f32 %v1863_v41, %v2231_v38  ;;  %v627_v44 = vadd.f32 %v2231_v38, %v626_v42  ;;  %v754_v45 = vpop.f32.mrb[1].mxu1  ;;  %v1832_v46 = vpop.f32.mrb[2].mxu0 }
  0xf2   : > { %v755_v47 = vadd.f32 %v2231_v38, %v754_v45  ;;  %v638_v48 = vadd.f32 %v1832_v46, %v2231_v38  ;;  %v1864_v49 = vpop.f32.mrb[2].mxu1  ;;  %v629_v50 = vpop.f32.mrb[3].mxu0  ;;  %v883_v54 = vmax.f32 %v635_v40, 0.0 }
  0xf3   : > { %v766_v51 = vadd.f32 %v1864_v49, %v2231_v38  ;;  %v630_v52 = vadd.f32 %v2231_v38, %v629_v50  ;;  %v757_v53 = vpop.f32.mrb[3].mxu1  ;;  %v915_v57 = vmax.f32 %v763_v43, 0.0  ;;  %v881_v58 = vmax.f32 %v627_v44, 0.0 }
  0xf4   : > { %v884_v55 = vmax.f32 %v638_v48, 0.0  ;;  %v758_v56 = vadd.f32 %v2231_v38, %v757_v53  ;;  %v913_v61 = vmax.f32 %v755_v47, 0.0 }
  0xf5   : > { %v916_v59 = vmax.f32 %v766_v51, 0.0  ;;  %v882_v60 = vmax.f32 %v630_v52, 0.0 }
  0xf6   : > { %v1608_v62 = vpack.c.bf16 %v884_v55, %v883_v54  ;;  %v914_v63 = vmax.f32 %v758_v56, 0.0 }
  0xf7   : > { %v1688_v0 = vpack.c.bf16 %v916_v59, %v915_v57  ;;  %v1603_v1 = vpack.c.bf16 %v882_v60, %v881_v58  ;;  %v1835_v2 = vpop.f32.mrb[4].mxu0 }
  0xf8   : > { %1760 = vst [vmem:[%s2243_s19 + $0x8] sm:$0xff] %v1608_v62   ;;  %v1683_v3 = vpack.c.bf16 %v914_v63, %v913_v61  ;;  %v651_v4 = vadd.f32 %v1835_v2, %v2231_v38  ;;  %v1867_v5 = vpop.f32.mrb[4].mxu1  ;;  %v642_v6 = vpop.f32.mrb[5].mxu0 }
  0xf9   : > { %1776 = vst [vmem:[%s2243_s19 + $0x88] sm:$0xff] %v1688_v0   ;;  %1604 = vst [vmem:[%s2243_s19] sm:$0xff] %v1603_v1   ;;  %v779_v7 = vadd.f32 %v1867_v5, %v2231_v38  ;;  %v643_v8 = vadd.f32 %v2231_v38, %v642_v6  ;;  %v770_v9 = vpop.f32.mrb[5].mxu1  ;;  %v1836_v10 = vpop.f32.mrb[6].mxu0 }
  0xfa   : > { %1775 = vst [vmem:[%s2243_s19 + $0x80] sm:$0xff] %v1683_v3   ;;  %v771_v11 = vadd.f32 %v2231_v38, %v770_v9  ;;  %v654_v12 = vadd.f32 %v1836_v10, %v2231_v38  ;;  %v1868_v13 = vpop.f32.mrb[6].mxu1  ;;  %v645_v14 = vpop.f32.mrb[7].mxu0  ;;  %v887_v18 = vmax.f32 %v651_v4, 0.0 }
  0xfb   : > { %v782_v15 = vadd.f32 %v1868_v13, %v2231_v38  ;;  %v646_v16 = vadd.f32 %v2231_v38, %v645_v14  ;;  %v773_v17 = vpop.f32.mrb[7].mxu1  ;;  %v919_v21 = vmax.f32 %v779_v7, 0.0  ;;  %v885_v22 = vmax.f32 %v643_v8, 0.0 }
  0xfc   : > { %v888_v19 = vmax.f32 %v654_v12, 0.0  ;;  %v774_v20 = vadd.f32 %v2231_v38, %v773_v17  ;;  %v917_v25 = vmax.f32 %v771_v11, 0.0 }
  0xfd   : > { %v920_v23 = vmax.f32 %v782_v15, 0.0  ;;  %v886_v24 = vmax.f32 %v646_v16, 0.0 }
  0xfe   : > { %v1618_v26 = vpack.c.bf16 %v888_v19, %v887_v18  ;;  %v918_v27 = vmax.f32 %v774_v20, 0.0 }
  0xff   : > { %v1698_v28 = vpack.c.bf16 %v920_v23, %v919_v21  ;;  %v1613_v29 = vpack.c.bf16 %v886_v24, %v885_v22  ;;  %v1839_v30 = vpop.f32.mrb[8].mxu0 }
 0x100   : > { %1762 = vst [vmem:[%s2243_s19 + $0x18] sm:$0xff] %v1618_v26   ;;  %v1693_v31 = vpack.c.bf16 %v918_v27, %v917_v25  ;;  %v667_v32 = vadd.f32 %v1839_v30, %v2231_v38  ;;  %v1871_v33 = vpop.f32.mrb[8].mxu1  ;;  %v658_v34 = vpop.f32.mrb[9].mxu0 }
 0x101   : > { %1778 = vst [vmem:[%s2243_s19 + $0x98] sm:$0xff] %v1698_v28   ;;  %1761 = vst [vmem:[%s2243_s19 + $0x10] sm:$0xff] %v1613_v29   ;;  %v795_v35 = vadd.f32 %v1871_v33, %v2231_v38  ;;  %v659_v36 = vadd.f32 %v2231_v38, %v658_v34  ;;  %v786_v37 = vpop.f32.mrb[9].mxu1  ;;  %v1840_v39 = vpop.f32.mrb[10].mxu0 }
 0x102   : > { %1777 = vst [vmem:[%s2243_s19 + $0x90] sm:$0xff] %v1693_v31   ;;  %v787_v40 = vadd.f32 %v2231_v38, %v786_v37  ;;  %v670_v41 = vadd.f32 %v1840_v39, %v2231_v38  ;;  %v1872_v42 = vpop.f32.mrb[10].mxu1  ;;  %v661_v43 = vpop.f32.mrb[11].mxu0  ;;  %v891_v47 = vmax.f32 %v667_v32, 0.0 }
 0x103   : > { %v798_v44 = vadd.f32 %v1872_v42, %v2231_v38  ;;  %v662_v45 = vadd.f32 %v2231_v38, %v661_v43  ;;  %v789_v46 = vpop.f32.mrb[11].mxu1  ;;  %v923_v50 = vmax.f32 %v795_v35, 0.0  ;;  %v889_v51 = vmax.f32 %v659_v36, 0.0 }
 0x104   : > { %v892_v48 = vmax.f32 %v670_v41, 0.0  ;;  %v790_v49 = vadd.f32 %v2231_v38, %v789_v46  ;;  %v921_v54 = vmax.f32 %v787_v40, 0.0 }
 0x105   : > { %v924_v52 = vmax.f32 %v798_v44, 0.0  ;;  %v890_v53 = vmax.f32 %v662_v45, 0.0 }
 0x106   : > { %v1628_v55 = vpack.c.bf16 %v892_v48, %v891_v47  ;;  %v922_v56 = vmax.f32 %v790_v49, 0.0 }
 0x107   : > { %v1708_v57 = vpack.c.bf16 %v924_v52, %v923_v50  ;;  %v1623_v58 = vpack.c.bf16 %v890_v53, %v889_v51  ;;  %v1843_v59 = vpop.f32.mrb[12].mxu0 }
 0x108   : > { %1764 = vst [vmem:[%s2243_s19 + $0x28] sm:$0xff] %v1628_v55   ;;  %v1703_v60 = vpack.c.bf16 %v922_v56, %v921_v54  ;;  %v683_v61 = vadd.f32 %v1843_v59, %v2231_v38  ;;  %v1875_v62 = vpop.f32.mrb[12].mxu1  ;;  %v674_v63 = vpop.f32.mrb[13].mxu0 }
 0x109   : > { %1780 = vst [vmem:[%s2243_s19 + $0xa8] sm:$0xff] %v1708_v57   ;;  %1763 = vst [vmem:[%s2243_s19 + $0x20] sm:$0xff] %v1623_v58   ;;  %v811_v0 = vadd.f32 %v1875_v62, %v2231_v38  ;;  %v675_v1 = vadd.f32 %v2231_v38, %v674_v63  ;;  %v802_v2 = vpop.f32.mrb[13].mxu1  ;;  %v1844_v3 = vpop.f32.mrb[14].mxu0 }
 0x10a   : > { %1779 = vst [vmem:[%s2243_s19 + $0xa0] sm:$0xff] %v1703_v60   ;;  %v803_v4 = vadd.f32 %v2231_v38, %v802_v2  ;;  %v686_v5 = vadd.f32 %v1844_v3, %v2231_v38  ;;  %v1876_v6 = vpop.f32.mrb[14].mxu1  ;;  %v677_v7 = vpop.f32.mrb[15].mxu0  ;;  %v895_v11 = vmax.f32 %v683_v61, 0.0 }
 0x10b   : > { %v814_v8 = vadd.f32 %v1876_v6, %v2231_v38  ;;  %v678_v9 = vadd.f32 %v2231_v38, %v677_v7  ;;  %v805_v10 = vpop.f32.mrb[15].mxu1  ;;  %v927_v14 = vmax.f32 %v811_v0, 0.0  ;;  %v893_v15 = vmax.f32 %v675_v1, 0.0 }
 0x10c   : > { %v896_v12 = vmax.f32 %v686_v5, 0.0  ;;  %v806_v13 = vadd.f32 %v2231_v38, %v805_v10  ;;  %v925_v18 = vmax.f32 %v803_v4, 0.0 }
 0x10d   : > { %v928_v16 = vmax.f32 %v814_v8, 0.0  ;;  %v894_v17 = vmax.f32 %v678_v9, 0.0 }
 0x10e   : > { %v1638_v19 = vpack.c.bf16 %v896_v12, %v895_v11  ;;  %v926_v20 = vmax.f32 %v806_v13, 0.0 }
 0x10f   : > { %v1718_v21 = vpack.c.bf16 %v928_v16, %v927_v14  ;;  %v1633_v22 = vpack.c.bf16 %v894_v17, %v893_v15  ;;  %v1847_v23 = vpop.f32.mrb[16].mxu0 }
 0x110   : > { %1766 = vst [vmem:[%s2243_s19 + $0x38] sm:$0xff] %v1638_v19   ;;  %v1713_v24 = vpack.c.bf16 %v926_v20, %v925_v18  ;;  %v699_v25 = vadd.f32 %v1847_v23, %v2231_v38  ;;  %v1879_v26 = vpop.f32.mrb[16].mxu1  ;;  %v690_v27 = vpop.f32.mrb[17].mxu0 }
 0x111   : > { %1782 = vst [vmem:[%s2243_s19 + $0xb8] sm:$0xff] %v1718_v21   ;;  %1765 = vst [vmem:[%s2243_s19 + $0x30] sm:$0xff] %v1633_v22   ;;  %v827_v28 = vadd.f32 %v1879_v26, %v2231_v38  ;;  %v691_v29 = vadd.f32 %v2231_v38, %v690_v27  ;;  %v818_v30 = vpop.f32.mrb[17].mxu1  ;;  %v1848_v31 = vpop.f32.mrb[18].mxu0 }
 0x112   : > { %1781 = vst [vmem:[%s2243_s19 + $0xb0] sm:$0xff] %v1713_v24   ;;  %v819_v32 = vadd.f32 %v2231_v38, %v818_v30  ;;  %v702_v33 = vadd.f32 %v1848_v31, %v2231_v38  ;;  %v1880_v34 = vpop.f32.mrb[18].mxu1  ;;  %v693_v35 = vpop.f32.mrb[19].mxu0  ;;  %v899_v40 = vmax.f32 %v699_v25, 0.0 }
 0x113   : > { %v830_v36 = vadd.f32 %v1880_v34, %v2231_v38  ;;  %v694_v37 = vadd.f32 %v2231_v38, %v693_v35  ;;  %v821_v39 = vpop.f32.mrb[19].mxu1  ;;  %v931_v43 = vmax.f32 %v827_v28, 0.0  ;;  %v897_v44 = vmax.f32 %v691_v29, 0.0 }
 0x114   : > { %v900_v41 = vmax.f32 %v702_v33, 0.0  ;;  %v822_v42 = vadd.f32 %v2231_v38, %v821_v39  ;;  %v929_v47 = vmax.f32 %v819_v32, 0.0 }
 0x115   : > { %v932_v45 = vmax.f32 %v830_v36, 0.0  ;;  %v898_v46 = vmax.f32 %v694_v37, 0.0 }
 0x116   : > { %v1648_v48 = vpack.c.bf16 %v900_v41, %v899_v40  ;;  %v930_v49 = vmax.f32 %v822_v42, 0.0 }
 0x117   : > { %v1728_v50 = vpack.c.bf16 %v932_v45, %v931_v43  ;;  %v1643_v51 = vpack.c.bf16 %v898_v46, %v897_v44  ;;  %v1851_v52 = vpop.f32.mrb[20].mxu0 }
 0x118   : > { %1768 = vst [vmem:[%s2243_s19 + $0x48] sm:$0xff] %v1648_v48   ;;  %v1723_v53 = vpack.c.bf16 %v930_v49, %v929_v47  ;;  %v715_v54 = vadd.f32 %v1851_v52, %v2231_v38  ;;  %v1883_v55 = vpop.f32.mrb[20].mxu1  ;;  %v706_v56 = vpop.f32.mrb[21].mxu0 }
 0x119   : > { %1784 = vst [vmem:[%s2243_s19 + $0xc8] sm:$0xff] %v1728_v50   ;;  %1767 = vst [vmem:[%s2243_s19 + $0x40] sm:$0xff] %v1643_v51   ;;  %v843_v57 = vadd.f32 %v1883_v55, %v2231_v38  ;;  %v707_v58 = vadd.f32 %v2231_v38, %v706_v56  ;;  %v834_v59 = vpop.f32.mrb[21].mxu1  ;;  %v1852_v60 = vpop.f32.mrb[22].mxu0 }
 0x11a   : > { %1783 = vst [vmem:[%s2243_s19 + $0xc0] sm:$0xff] %v1723_v53   ;;  %v835_v61 = vadd.f32 %v2231_v38, %v834_v59  ;;  %v718_v62 = vadd.f32 %v1852_v60, %v2231_v38  ;;  %v1884_v63 = vpop.f32.mrb[22].mxu1  ;;  %v709_v0 = vpop.f32.mrb[23].mxu0  ;;  %v903_v4 = vmax.f32 %v715_v54, 0.0 }
 0x11b   : > { %v846_v1 = vadd.f32 %v1884_v63, %v2231_v38  ;;  %v710_v2 = vadd.f32 %v2231_v38, %v709_v0  ;;  %v837_v3 = vpop.f32.mrb[23].mxu1  ;;  %v935_v7 = vmax.f32 %v843_v57, 0.0  ;;  %v901_v8 = vmax.f32 %v707_v58, 0.0 }
 0x11c   : > { %v904_v5 = vmax.f32 %v718_v62, 0.0  ;;  %v838_v6 = vadd.f32 %v2231_v38, %v837_v3  ;;  %v933_v11 = vmax.f32 %v835_v61, 0.0 }
 0x11d   : > { %v936_v9 = vmax.f32 %v846_v1, 0.0  ;;  %v902_v10 = vmax.f32 %v710_v2, 0.0 }
 0x11e   : > { %v1658_v12 = vpack.c.bf16 %v904_v5, %v903_v4  ;;  %v934_v13 = vmax.f32 %v838_v6, 0.0 }
 0x11f   : > { %v1738_v14 = vpack.c.bf16 %v936_v9, %v935_v7  ;;  %v1653_v15 = vpack.c.bf16 %v902_v10, %v901_v8  ;;  %v1855_v16 = vpop.f32.mrb[24].mxu0 }
 0x120   : > { %1770 = vst [vmem:[%s2243_s19 + $0x58] sm:$0xff] %v1658_v12   ;;  %v1733_v17 = vpack.c.bf16 %v934_v13, %v933_v11  ;;  %v731_v18 = vadd.f32 %v1855_v16, %v2231_v38  ;;  %v1887_v19 = vpop.f32.mrb[24].mxu1  ;;  %v722_v20 = vpop.f32.mrb[25].mxu0 }
 0x121   : > { %1786 = vst [vmem:[%s2243_s19 + $0xd8] sm:$0xff] %v1738_v14   ;;  %1769 = vst [vmem:[%s2243_s19 + $0x50] sm:$0xff] %v1653_v15   ;;  %v859_v21 = vadd.f32 %v1887_v19, %v2231_v38  ;;  %v723_v22 = vadd.f32 %v2231_v38, %v722_v20  ;;  %v850_v23 = vpop.f32.mrb[25].mxu1  ;;  %v1856_v24 = vpop.f32.mrb[26].mxu0 }
 0x122   : > { %1785 = vst [vmem:[%s2243_s19 + $0xd0] sm:$0xff] %v1733_v17   ;;  %v851_v25 = vadd.f32 %v2231_v38, %v850_v23  ;;  %v734_v26 = vadd.f32 %v1856_v24, %v2231_v38  ;;  %v1888_v27 = vpop.f32.mrb[26].mxu1  ;;  %v725_v28 = vpop.f32.mrb[27].mxu0  ;;  %v907_v32 = vmax.f32 %v731_v18, 0.0 }
 0x123   : > { %v862_v29 = vadd.f32 %v1888_v27, %v2231_v38  ;;  %v726_v30 = vadd.f32 %v2231_v38, %v725_v28  ;;  %v853_v31 = vpop.f32.mrb[27].mxu1  ;;  %v939_v35 = vmax.f32 %v859_v21, 0.0  ;;  %v905_v36 = vmax.f32 %v723_v22, 0.0 }
 0x124   : > { %v908_v33 = vmax.f32 %v734_v26, 0.0  ;;  %v854_v34 = vadd.f32 %v2231_v38, %v853_v31  ;;  %v937_v40 = vmax.f32 %v851_v25, 0.0 }
 0x125   : > { %v940_v37 = vmax.f32 %v862_v29, 0.0  ;;  %v906_v39 = vmax.f32 %v726_v30, 0.0 }
 0x126   : > { %v1668_v41 = vpack.c.bf16 %v908_v33, %v907_v32  ;;  %v938_v42 = vmax.f32 %v854_v34, 0.0 }
 0x127   : > { %v1748_v43 = vpack.c.bf16 %v940_v37, %v939_v35  ;;  %v1663_v44 = vpack.c.bf16 %v906_v39, %v905_v36  ;;  %v1859_v45 = vpop.f32.mrb[28].mxu0 }
 0x128   : > { %1772 = vst [vmem:[%s2243_s19 + $0x68] sm:$0xff] %v1668_v41   ;;  %v1743_v46 = vpack.c.bf16 %v938_v42, %v937_v40  ;;  %v747_v47 = vadd.f32 %v1859_v45, %v2231_v38  ;;  %v1891_v48 = vpop.f32.mrb[28].mxu1  ;;  %v738_v49 = vpop.f32.mrb[29].mxu0 }
 0x129   : > { %1788 = vst [vmem:[%s2243_s19 + $0xe8] sm:$0xff] %v1748_v43   ;;  %1771 = vst [vmem:[%s2243_s19 + $0x60] sm:$0xff] %v1663_v44   ;;  %v875_v50 = vadd.f32 %v1891_v48, %v2231_v38  ;;  %v739_v51 = vadd.f32 %v2231_v38, %v738_v49  ;;  %v866_v52 = vpop.f32.mrb[29].mxu1  ;;  %v1860_v53 = vpop.f32.mrb[30].mxu0 }
 0x12a   : > { %1787 = vst [vmem:[%s2243_s19 + $0xe0] sm:$0xff] %v1743_v46   ;;  %v867_v54 = vadd.f32 %v2231_v38, %v866_v52  ;;  %v750_v55 = vadd.f32 %v1860_v53, %v2231_v38  ;;  %v1892_v56 = vpop.f32.mrb[30].mxu1  ;;  %v741_v57 = vpop.f32.mrb[31].mxu0  ;;  %v911_v61 = vmax.f32 %v747_v47, 0.0 }
 0x12b   : > { %v878_v58 = vadd.f32 %v1892_v56, %v2231_v38  ;;  %v742_v59 = vadd.f32 %v2231_v38, %v741_v57  ;;  %v869_v60 = vpop.f32.mrb[31].mxu1  ;;  %v943_v0 = vmax.f32 %v875_v50, 0.0  ;;  %v909_v1 = vmax.f32 %v739_v51, 0.0 }
 0x12c   : > { %v912_v62 = vmax.f32 %v750_v55, 0.0  ;;  %v870_v63 = vadd.f32 %v2231_v38, %v869_v60  ;;  %v941_v4 = vmax.f32 %v867_v54, 0.0  ;;  %1272 = sbr.rel (!%p2132_p4) target bundleno = 335 (0x14f), region = 36 }
 0x12d   : > { %v944_v2 = vmax.f32 %v878_v58, 0.0  ;;  %v910_v3 = vmax.f32 %v742_v59, 0.0 }
 0x12e   : > { %v1678_v5 = vpack.c.bf16 %v912_v62, %v911_v61  ;;  %v942_v6 = vmax.f32 %v870_v63, 0.0 }
 0x12f   : > { %v1758_v7 = vpack.c.bf16 %v944_v2, %v943_v0  ;;  %v1673_v8 = vpack.c.bf16 %v910_v3, %v909_v1 }
 0x130   : > { %1774 = vst [vmem:[%s2243_s19 + $0x78] sm:$0xff] %v1678_v5   ;;  %v1753_v9 = vpack.c.bf16 %v942_v6, %v941_v4 }
 0x131   : > { %1790 = vst [vmem:[%s2243_s19 + $0xf8] sm:$0xff] %v1758_v7   ;;  %1773 = vst [vmem:[%s2243_s19 + $0x70] sm:$0xff] %v1673_v8  }
 0x132   : > { %1789 = vst [vmem:[%s2243_s19 + $0xf0] sm:$0xff] %v1753_v9  }
 0x133   : > { %s2415_s23 = smov (!%p1275_p12, %s1274_s23), 64 }
 0x134   : > { %s2340_s26 = sshll.u32 %s2415_s23, 6 }
 0x135   : > { %s1279_s27 = ssub.s32 4096, %s2340_s26 }
 0x136   : > { %1280 = vsyncadd %s2335_s21, %s1279_s27  ;;  %p1529_p13 = scmp.ne.s32.totalorder %s2340_s26, 0  ;;  %s1599_s28 = sshll.u32 %s2058_s15, 12 }
 0x137   : > { %s2349_s4 = scalar_lea.hbm %s2404_s3, %s1599_s28  ;;  %s1286_s30 = sshll.u32 %s2243_s19, 4  ;;  %s2352_s30 = int_to_ptr.vmem [resolvable:$true] %s1286_s30 }
 0x138   : > { %s1988_s5 = scalar_lea.vmem %s2352_s30, %s2340_s26  ;;  %s2069_s6 = smov [#allocation2]  }
 0x139   : > { %p1989_p0 = scmp.ne.s32.totalorder %s2352_s30, %s1988_s5  ;;  %s1992_s7 = sshll.u32 %s2069_s6, 4  ;;  %s1993_s7 = int_to_ptr.vmem [resolvable:$false] %s1992_s7 }
 0x13a   : > { %s1994_s15 = scalar_lea.vmem %s1993_s7, 8192  ;;  %p1995_p3 = scmp.lt.s32.totalorder %s2352_s30, %s1993_s7 }
 0x13b   : > { %p1990_p1 = pnand %p1989_p0, %p1529_p13  ;;  %p1996_p4 = scmp.lt.s32.totalorder %s1994_s15, %s1988_s5 }
 0x13d   : > { %p1991_p2 = pneg %p1990_p1  ;;  %p1997_p5 = por %p1996_p4, %p1995_p3 }
 0x13f   : > { %p1998_p6 = pnand %p1997_p5, %p1991_p2 }
 0x141   : > { %2001 = shalt.err (!%p1998_p6)
}
 0x142   : > { %s2002_s8 = scalar_lea.hbm %s2349_s4, %s2340_s26  ;;  %s2006_s11 = scalar_lea.hbm %s2404_s3, 355264 }
 0x143   : > { %p2003_p7 = scmp.ne.s32.totalorder %s2349_s4, %s2002_s8  ;;  %p2007_p11 = scmp.lt.u32.totalorder %s2349_s4, %s2404_s3 }
 0x144   : > { %p2008_p12 = scmp.lt.u32.totalorder %s2006_s11, %s2002_s8  ;;  %p2010_p1 = scmp.lt.u32.totalorder %s2002_s8, %s2349_s4 }
 0x145   : > { %p2004_p9 = pnand %p2003_p7, %p1529_p13 }
 0x146   : > { %p2009_p0 = por %p2008_p12, %p2007_p11 }
 0x147   : > { %p2005_p10 = pneg %p2004_p9 }
 0x148   : > { %p2011_p2 = por %p2010_p1, %p2009_p0 }
 0x14a   : > { %p2012_p3 = pnand %p2011_p2, %p2005_p10 }
 0x14c   : > { %2015 = shalt.err (!%p2012_p3)
}
 0x14d   : > { %s2070_s23 = smov 64   ;;  %s2071_s27 = smov 4  }
 0x14e   : > { %1292 = dma.vmem_to_hbm [thread:$0]  (%p1529_p13), %s2352_s30, %s2340_s26, %s2349_s4, %s2335_s21, %s2070_s23, %s2070_s23, %s2071_s27  }
 0x14f PF: > { %p1902_p4 = scmp.ge.s32.totalorder %s2066_s17, 2  ;;  %s1301_s28 = sand.u32 1, %s2046_s12  }
 0x150   : > { %s1302_s29 = scalar_lea.sflag [#allocation3], %s1301_s28 }
 0x151   : > { %p1899_p5 = pnand %p1902_p4, %p2139_p8 }
 0x153   : > { %2041 = dma.done.wait (!%p1899_p5), %s1302_s29, 4096  }
 0x154   : > { %2043 = vsyncadd (!%p1899_p5), %s1302_s29, 4294963200  ;;  %s16_s17 = sadd.s32 1, %s2066_s17   ;;  %s2407_s12 = smov %s2050_s13 }
 0x155   : > { %p13_p6 = scmp.ge.s32.totalorder %s16_s17, 89   ;;  %s2408_s13 = smov %s2054_s14 }
 0x156   : > { %s2409_s14 = smov %s2145_s25  ;;  %s2410_s15 = smov %s2062_s16 }
 0x157   : > { %s2411_s16 = smov %s2413_s20  ;;  %15 = sbr.rel (!%p13_p6) target bundleno = 4 (0x4), region = 73 }
 0x15e   :  { %1307 = vsyncpa [#allocation3], 1 }
 0x15f   :  { %1309 = vsyncpa [#allocation3 + $0x1], 1 }

</bundles_post_ra>
